<compile_context>
chip_gen: v5e
topology: v5e:2x2
jax: 0.10.0
libtpu: 0.0.40
codegen_flags: <defaults>
</compile_context>

<pallas_src>
import jax
import jax.numpy as jnp
from jax.experimental import pallas as pl
from jax.experimental.pallas import tpu as pltpu


def _embed_patches_kernel(x_ref, w_ref, pos_ref, o_ref):
    """x_ref:   VMEM (Bb, N, P)  block of Bb batch elements
       w_ref:   VMEM (P, E)      transposed linear weight (resident)
       pos_ref: VMEM (N, E)      positional embeddings + bias (resident)
       o_ref:   VMEM (Bb, N, E)  output block"""
    Bb, N, P = x_ref.shape
    E = w_ref.shape[1]
    # Merge leading dims -> one tall MXU matmul (M = Bb*N). Leading-dim merge is a
    # free (layout-preserving) reshape on TPU.
    x2 = x_ref[...].reshape(Bb * N, P)
    acc = jnp.dot(x2, w_ref[...], preferred_element_type=jnp.float32)
    out = acc.reshape(Bb, N, E) + pos_ref[...]          # (N,E) broadcasts over Bb
    o_ref[...] = out.astype(o_ref.dtype)


def _choose_block_batch(B, N, P, E, itemsize,
                        vmem_budget_bytes=12 * 1024 * 1024):
    """Largest divisor of B that fits the VMEM budget (double-buffered x + out)
    while keeping >= 2 grid steps (for v7x's two TensorCores) when B >= 2."""
    per_elem = N * (P + E) * itemsize                 # one batch element: x + out
    max_by_vmem = max(1, vmem_budget_bytes // (2 * per_elem))   # 2x = double buffer
    max_by_grid = max(1, B // 2) if B >= 2 else 1     # keep >= 2 steps for megacore
    cap = max(1, min(B, max_by_vmem, max_by_grid))
    bb = 1
    for d in range(1, cap + 1):
        if B % d == 0:
            bb = d
    return bb


def embed_patches(x, weight, bias, pos_embed):
    """x: (B, N, P) float array
       weight: (E, P) torch-layout Linear weight
       bias: (E,)
       pos_embed: (N, E)
       returns: (B, N, E)"""
    B, N, P = x.shape
    E, P_w = weight.shape
    assert P_w == P
    assert pos_embed.shape == (N, E)

    # Hoistable pre-processing (do once outside if called repeatedly):
    w_t = weight.T                                   # (P, E) -> kernel does x @ w
    pos_plus_bias = pos_embed + bias[None, :]        # fold bias into pos table

    itemsize = jnp.dtype(x.dtype).itemsize
    Bb = _choose_block_batch(B, N, P, E, itemsize)
    num_steps = B // Bb

    cost = pl.CostEstimate(
        flops=2 * B * N * P * E,
        transcendentals=0,
        bytes_accessed=itemsize * (B * N * P + P * E + N * E + B * N * E),
    )

    return pl.pallas_call(
        _embed_patches_kernel,
        out_shape=jax.ShapeDtypeStruct((B, N, E), x.dtype),
        grid_spec=pltpu.PrefetchScalarGridSpec(
            num_scalar_prefetch=0,
            grid=(num_steps,),
            in_specs=[
                # Bb batch elements per grid step.
                pl.BlockSpec((Bb, N, P), lambda b: (b, 0, 0)),
                # weight / (pos+bias): constant index_map -> stay resident in VMEM.
                pl.BlockSpec((P, E), lambda b: (0, 0)),
                pl.BlockSpec((N, E), lambda b: (0, 0)),
            ],
            out_specs=pl.BlockSpec((Bb, N, E), lambda b: (b, 0, 0)),
        ),
        compiler_params=pltpu.CompilerParams(
            dimension_semantics=("parallel",),       # batch blocks are independent
        ),
        cost_estimate=cost,
    )(x, w_t, pos_plus_bias)


if __name__ == "__main__":
    # Module defaults: patch_dim=192, embed_size=256, num_patches=64.
    # B=8 exercises the fused path (Bb=4 -> M=256, grid=(2,)).
    B, N, P, E = 8, 64, 192, 256

    key = jax.random.PRNGKey(0)
    kx, kw, kb, kp = jax.random.split(key, 4)

    x = jax.random.normal(kx, (B, N, P), dtype=jnp.float32)
    weight = jax.random.normal(kw, (E, P), dtype=jnp.float32) * 0.02
    bias = jax.random.normal(kb, (E,), dtype=jnp.float32) * 0.02
    # PyTorch initializes positional_embeddings to zeros; random here so the
    # positional-add path is actually exercised.
    pos_embed = jax.random.normal(kp, (N, E), dtype=jnp.float32) * 0.02

    out = embed_patches(x, weight, bias, pos_embed)
    jax.block_until_ready(out)

    # Reference: plain JAX linear + positional add, same (default) matmul
    # precision as the in-kernel dot so the comparison is apples-to-apples.
    ref = (
        jnp.einsum("bnp,ep->bne", x, weight)
        + bias[None, None, :]
        + pos_embed[None, :, :]
    )

    assert out.shape == (B, N, E)
    assert jnp.allclose(out, ref, atol=1e-3, rtol=1e-3)

    print("KERNEL_OK")
</pallas_src>

<mosaic_0001>
module attributes {stable_mosaic.version = 11 : i64} {
  func.func @_embed_patches_kernel(%arg0: i32, %arg1: memref<4x64x192xf32, #tpu.memory_space<vmem>>, %arg2: memref<192x256xf32, #tpu.memory_space<vmem>>, %arg3: memref<64x256xf32, #tpu.memory_space<vmem>>, %arg4: memref<4x64x256xf32, #tpu.memory_space<vmem>>) attributes {dimension_semantics = [#tpu.dimension_semantics<parallel>], iteration_bounds = array<i64: 2>, scalar_prefetch = 0 : i64, scratch_operands = 0 : i64, tpu.core_type = #tpu.core_type<tc>, window_params = [{transform_indices = @transform_0, window_bounds = array<i64: 4, 64, 192>}, {pipeline_mode = #tpu.pipeline_mode<synchronous>, transform_indices = @transform_1, window_bounds = array<i64: 192, 256>}, {pipeline_mode = #tpu.pipeline_mode<synchronous>, transform_indices = @transform_2, window_bounds = array<i64: 64, 256>}, {transform_indices = @transform_3, window_bounds = array<i64: 4, 64, 256>}]} {
    %c0 = arith.constant 0 : index
    %c0_0 = arith.constant 0 : index
    %c0_1 = arith.constant 0 : index
    %0 = vector.load %arg1[%c0, %c0_0, %c0_1] : memref<4x64x192xf32, #tpu.memory_space<vmem>>, vector<4x64x192xf32>
    %1 = vector.shape_cast %0 : vector<4x64x192xf32> to vector<256x192xf32>
    %c0_2 = arith.constant 0 : index
    %c0_3 = arith.constant 0 : index
    %2 = vector.load %arg2[%c0_2, %c0_3] : memref<192x256xf32, #tpu.memory_space<vmem>>, vector<192x256xf32>
    %cst = arith.constant dense<0.000000e+00> : vector<256x256xf32>
    %3 = tpu.matmul %1, %2, %cst {dimension_numbers = #tpu.dot_dimension_numbers<[1], [0], [0], [1], [0, 0, 1, 1], [], []>} : vector<256x192xf32>, vector<192x256xf32>, vector<256x256xf32> -> vector<256x256xf32>
    %4 = vector.shape_cast %3 : vector<256x256xf32> to vector<4x64x256xf32>
    %c0_4 = arith.constant 0 : index
    %c0_5 = arith.constant 0 : index
    %5 = vector.load %arg3[%c0_4, %c0_5] : memref<64x256xf32, #tpu.memory_space<vmem>>, vector<64x256xf32>
    %6 = vector.shape_cast %5 : vector<64x256xf32> to vector<1x64x256xf32>
    %7 = vector.broadcast %6 : vector<1x64x256xf32> to vector<4x64x256xf32>
    %8 = arith.addf %4, %7 : vector<4x64x256xf32>
    %c0_6 = arith.constant 0 : index
    %c0_7 = arith.constant 0 : index
    %c0_8 = arith.constant 0 : index
    %9 = vector.load %arg4[%c0_6, %c0_7, %c0_8] : memref<4x64x256xf32, #tpu.memory_space<vmem>>, vector<4x64x256xf32>
    tpu.vector_store %arg4[%c0_6, %c0_7, %c0_8], %8 {strides = array<i32>} : memref<4x64x256xf32, #tpu.memory_space<vmem>>, vector<4x64x256xf32>,
    return
  }
  func.func @transform_0(%arg0: i32) -> (i32, i32, i32) {
    %c0_i32 = arith.constant 0 : i32
    %c0_i32_0 = arith.constant 0 : i32
    %c0_i32_1 = arith.constant 0 : i32
    return %arg0, %c0_i32, %c0_i32_0 : i32, i32, i32
  }
  func.func @transform_1(%arg0: i32) -> (i32, i32) {
    %c0_i32 = arith.constant 0 : i32
    %c0_i32_0 = arith.constant 0 : i32
    %c0_i32_1 = arith.constant 0 : i32
    return %c0_i32, %c0_i32_0 : i32, i32
  }
  func.func @transform_2(%arg0: i32) -> (i32, i32) {
    %c0_i32 = arith.constant 0 : i32
    %c0_i32_0 = arith.constant 0 : i32
    %c0_i32_1 = arith.constant 0 : i32
    return %c0_i32, %c0_i32_0 : i32, i32
  }
  func.func @transform_3(%arg0: i32) -> (i32, i32, i32) {
    %c0_i32 = arith.constant 0 : i32
    %c0_i32_0 = arith.constant 0 : i32
    %c0_i32_1 = arith.constant 0 : i32
    return %arg0, %c0_i32, %c0_i32_0 : i32, i32, i32
  }
}

</mosaic_0001>

<bundles_post_ra>
// kernel: tpu_custom_call.1
= control target key start
LH: loop header
LB: loop body
LE: loop exit
PB: predicated region body
PF: predicated region fallthrough
CT: control target
= control target key end

     0   :  { %8 = vsyncpa [#allocation3], 0  ;;  %s1935_s0 = inlined_call_operand.hbm [shape: f32[8,64,192], index: 0, kind: input, shape index: {}]   ;;  %s1936_s1 = inlined_call_operand.hbm [shape: f32[192,256], index: 1, kind: input, shape index: {}]   ;;  %s1937_s2 = inlined_call_operand.hbm [shape: f32[64,256], index: 2, kind: input, shape index: {}]   ;;  %s1938_s3 = inlined_call_operand.hbm [shape: f32[8,64,256], index: 3, kind: output, shape index: {}]  }
   0x1   :  { %10 = vsyncpa [#allocation3 + $0x1], 0 }
   0x2   :  { %11 = vsyncpa [#allocation6], 0 }
   0x3   :  { %12 = vsyncpa [#allocation4], 0 }
   0x4   :  { %14 = vsyncpa [#allocation4 + $0x1], 0  ;;  %s1488_s12 = smov 0   ;;  %s1490_s13 = smov 0  }
   0x5   :  { %s1492_s14 = smov 0   ;;  %s1494_s15 = smov 0  }
   0x6 LB: > { %s1509_s16 = sadd.s32 4294967295, %s1460_s15   ;;  %s1141_s17 = sadd.s32 4294967294, %s1460_s15   ;;  %s1460_s15 = sphi %s1494_s15, %s1948_s15   ;;  %s1456_s14 = sphi %s1492_s14, %s1947_s14   ;;  %s1452_s13 = sphi %s1490_s13, %s1946_s13   ;;  %s1448_s12 = sphi %s1488_s12, %s1945_s12  }
   0x7   : > { %p40_p0 = scmp.ne.s32.totalorder %s1452_s13, %s1448_s12  ;;  %p41_p1 = scmp.eq.s32.totalorder %s1509_s16, 0 }
   0x8   : > { %p106_p2 = scmp.eq.s32.totalorder %s1509_s16, 1  ;;  %p112_p3 = scmp.eq.s32.totalorder %s1141_s17, 1 }
   0x9   : > { %p1518_p4 = por %p41_p1, %p40_p0  ;;  %p1142_p5 = scmp.ge.s32.totalorder %s1460_s15, 1 }
   0xa   : > { %p1523_p6 = por %p112_p3, %p40_p0  ;;  %p119_p7 = scmp.lt.s32.totalorder %s1460_s15, 3 }
   0xb   : > { %s130_s22 = sshll.u32 %s1936_s1, 4  ;;  %s1462_s24 = smov [#allocation5]   ;;  %s131_s22 = int_to_ptr.hbm [resolvable:$true] %s130_s22 }
   0xc   : > { %p1531_p8 = pnand %p1142_p5, %p119_p7  ;;  %s132_s25 = sshll.u32 %s1462_s24, 4  ;;  %s133_s25 = int_to_ptr.vmem [resolvable:$true] %s132_s25 }
   0xd   : > { %s144_s28 = sshll.u32 %s1937_s2, 4  ;;  %s1463_s29 = smov 256   ;;  %s145_s28 = int_to_ptr.hbm [resolvable:$true] %s144_s28 }
   0xe   : > { %p1241_p9 = pneg %p1531_p8  ;;  %s1464_s30 = smov 16  }
   0xf   : > { %s1465_s4 = smov [#allocation7]   ;;  %s1550_s6 = sadd.s32 1, %s1460_s15  }
  0x10   : > { %p1242_p10 = pnand %p1241_p9, %p41_p1  ;;  %s146_s5 = sshll.u32 %s1465_s4, 4  ;;  %s147_s5 = int_to_ptr.vmem [resolvable:$true] %s146_s5 }
  0x11   : > { %s27_s7 = sadd.s32 1, %s1456_s14  ;;  %s24_s8 = ssub.s32 %s1460_s15, %s1550_s6 }
  0x12   : > { %1244 = dma.hbm_to_vmem [thread:$0]  (!%p1242_p10), %s131_s22, 6144, %s133_s25, [#allocation6], %s1463_s29, %s1463_s29, %s1464_s30  }
  0x13   : > { %1247 = dma.hbm_to_vmem [thread:$0]  (!%p1242_p10), %s145_s28, 2048, %s147_s5, [#allocation6], %s1463_s29, %s1463_s29, %s1464_s30  }
  0x14   : > { %p34_p12 = scmp.ne.s32.totalorder %s1456_s14, %s1452_s13  ;;  %p25_p13 = scmp.eq.s32.totalorder %s24_s8, 0 }
  0x15   : > { %p35_p0 = scmp.eq.s32.totalorder %s1460_s15, 0  ;;  %p1258_p5 = scmp.lt.s32.totalorder %s1460_s15, 2 }
  0x16   : > { %p1560_p3 = por %p106_p2, %p34_p12  ;;  %s160_s11 = sand.u32 1, %s1456_s14  }
  0x17   : > { %s1566_s10 = scalar_select %p25_p13, %s1456_s14, %s27_s7  }
  0x18   : > { %p36_p7 = por %p35_p0, %p34_p12  ;;  %s1146_s17 = sshll.u32 %s160_s11, 9 }
  0x19   : > { %s1226_s20 = sshll.u32 %s1460_s15, 9  ;;  %s164_s25 = scalar_lea.vmem [#allocation2], %s1146_s17 }
  0x1a   : > { %s170_s24 = scalar_lea.hbm %s1935_s0, %s1226_s20  ;;  %s173_s26 = sshll.u32 %s164_s25, 4  ;;  %s174_s26 = int_to_ptr.vmem [resolvable:$true] %s173_s26 }
  0x1b   : > { %s171_s27 = sshll.u32 %s170_s24, 4  ;;  %p1573_p2 = pnand %p1258_p5, %p36_p7  ;;  %s172_s27 = int_to_ptr.hbm [resolvable:$true] %s171_s27 }
  0x1c   : > { %s161_s4 = scalar_lea.sflag [#allocation3], %s160_s11  ;;  %s1360_s5 = sshra.s32 %s172_s27, 4  ;;  %s1361_s5 = int_to_ptr.hbm [resolvable:$true] %s1360_s5 }
  0x1d   : > { %s1362_s7 = scalar_lea.hbm %s1361_s5, 512  ;;  %p1364_p10 = pneg %p1573_p2 }
  0x1e   : > { %p1363_p9 = scmp.ne.s32.totalorder %s1361_s5, %s1362_s7  ;;  %s1367_s20 = scalar_lea.hbm %s1935_s0, 1024 }
  0x1f   : > { %p1368_p0 = scmp.lt.s32.totalorder %s1361_s5, %s1935_s0  ;;  %p1369_p5 = scmp.lt.s32.totalorder %s1367_s20, %s1362_s7 }
  0x20   : > { %p1365_p12 = pnand %p1364_p10, %p1363_p9 }
  0x21   : > { %p1370_p7 = por %p1369_p5, %p1368_p0 }
  0x22   : > { %p1366_p13 = pneg %p1365_p12 }
  0x24   : > { %p1371_p11 = pnand %p1370_p7, %p1366_p13 }
  0x26   : > { %1374 = shalt.err (!%p1371_p11)
}
  0x27   : > { %1251 = dma.hbm_to_vmem [thread:$0]  (!%p1573_p2), %s172_s27, 8192, %s174_s26, %s161_s4, %s1463_s29, %s1463_s29, %s1464_s30  }
  0x28   : > { %185 = sbr.rel (%p1531_p8) target bundleno = 468 (0x1d4), region = 32  ;;  %s1593_s11 = sand.u32 (!%p1531_p8), 1, %s1452_s13  }
  0x29   : > { %s1151_s24 = sshll.u32 (!%p1531_p8), %s1593_s11, 9  ;;  %s188_s25 = scalar_lea.sflag (!%p1531_p8), [#allocation3], %s1593_s11 }
  0x2a   : > { %s1599_s5 = scalar_lea.vmem (!%p1531_p8), [#allocation2], %s1151_s24 }
  0x2d   : > { %1435 = dma.done.wait (%p1518_p4), %s188_s25, 8192  }
  0x2e   : > { %1437 = vsyncadd (%p1518_p4), %s188_s25, 4294959104 }
  0x2f   : > { %1439 = dma.done.wait (%p41_p1), [#allocation6], 8192  }
  0x30   : > { %1441 = vsyncadd (%p41_p1), [#allocation6], 4294959104  ;;  %v322_v0 = vld [vmem:[#allocation5 + $0xf8] sm:$0xff]  ;;  %v320_v1 = vld [vmem:[#allocation5 + $0xe8] sm:$0xff]  ;;  %vm339_vm0 = vcmask 523264   ;;  %s1686_s18 = scalar_lea.vmem [#allocation8], %s1151_s24 }
  0x31   : > { %662 = vmatpush.msra.mxu2 %v322_v0  ;;  %v321_v2 = vld [vmem:[#allocation5 + $0xf0] sm:$0xff]  ;;  %v319_v3 = vld [vmem:[#allocation5 + $0xe0] sm:$0xff]  ;;  %v318_v4 = vld [vmem:[#allocation5 + $0xd8] sm:$0xff]  ;;  %s1228_s23 = sshll.u32 %s1509_s16, 9  ;;  %s1046_s27 = sshll.u32 %s1686_s18, 4  ;;  %s1047_s27 = int_to_ptr.vmem [resolvable:$true] %s1046_s27 }
  0x32   : > { %436 = vmatpush.msra.mxu0 %v321_v2  ;;  %v317_v5 = vld [vmem:[#allocation5 + $0xd0] sm:$0xff]  ;;  %v316_v6 = vld [vmem:[#allocation5 + $0xc8] sm:$0xff]  ;;  %v315_v7 = vld [vmem:[#allocation5 + $0xc0] sm:$0xff]  ;;  %s1045_s26 = scalar_lea.hbm %s1938_s3, %s1228_s23  ;;  %s1033_s16 = scalar_lea.sflag [#allocation4], %s1593_s11 }
  0x33   : > { %663 = vmatpush.msra.mxu2 %v320_v1  ;;  %v338_v8 = vld [vmem:[#allocation5 + $0x178] sm:$0xff]  ;;  %v336_v10 = vld [vmem:[#allocation5 + $0x168] sm:$0xff]  ;;  %v313_v11 = vld [vmem:[#allocation5 + $0xb0] sm:$0xff]  ;;  %s1048_s28 = sshll.u32 %s1045_s26, 4  ;;  %s1410_s20 = scalar_lea.hbm %s1938_s3, 1024  ;;  %s1049_s28 = int_to_ptr.hbm [resolvable:$true] %s1048_s28 }
  0x34   : > { %437 = vmatpush.msra.mxu0 %v319_v3  ;;  %v314_v9 = vld [vmem:[#allocation5 + $0xb8] sm:$0xff]  ;;  %783 = vmatpush.msra.mxu3 %v338_v8  ;;  %v337_v13 = vld [vmem:[#allocation5 + $0x170] sm:$0xff]  ;;  %v312_v14 = vld [vmem:[#allocation5 + $0xa8] sm:$0xff]  ;;  %s1404_s4 = sshra.s32 %s1049_s28, 4  ;;  %s1405_s4 = int_to_ptr.hbm [resolvable:$true] %s1404_s4 }
  0x35   : > { %664 = vmatpush.msra.mxu2 %v318_v4  ;;  %v334_v12 = vld [vmem:[#allocation5 + $0x158] sm:$0xff]  ;;  %v311_v15 = vld [vmem:[#allocation5 + $0xa0] sm:$0xff]  ;;  %557 = vmatpush.msra.mxu1 %v337_v13  ;;  %v332_v16 = vld [vmem:[#allocation5 + $0x148] sm:$0xff]  ;;  %s1406_s7 = scalar_lea.hbm %s1405_s4, 512  ;;  %p1411_p11 = scmp.lt.s32.totalorder %s1405_s4, %s1938_s3 }
  0x36   : > { %438 = vmatpush.msra.mxu0 %v317_v5  ;;  %784 = vmatpush.msra.mxu3 %v336_v10  ;;  %v335_v17 = vld [vmem:[#allocation5 + $0x160] sm:$0xff]  ;;  %v310_v18 = vld [vmem:[#allocation5 + $0x98] sm:$0xff]  ;;  %v333_v19 = vld [vmem:[#allocation5 + $0x150] sm:$0xff]  ;;  %p1407_p1 = scmp.ne.s32.totalorder %s1405_s4, %s1406_s7  ;;  %p1412_p2 = scmp.lt.s32.totalorder %s1410_s20, %s1406_s7 }
  0x37   : > { %665 = vmatpush.msra.mxu2 %v316_v6  ;;  %v309_v20 = vld [vmem:[#allocation5 + $0x90] sm:$0xff]  ;;  %558 = vmatpush.msra.mxu1 %v335_v17  ;;  %v330_v21 = vld [vmem:[#allocation5 + $0x138] sm:$0xff]  ;;  %v308_v22 = vld [vmem:[#allocation5 + $0x88] sm:$0xff] }
  0x38   : > { %439 = vmatpush.msra.mxu0 %v315_v7  ;;  %785 = vmatpush.msra.mxu3 %v334_v12  ;;  %v331_v23 = vld [vmem:[#allocation5 + $0x140] sm:$0xff]  ;;  %v328_v25 = vld [vmem:[#allocation5 + $0x128] sm:$0xff]  ;;  %v306_v26 = vld [vmem:[#allocation5 + $0x78] sm:$0xff]  ;;  %p1408_p4 = pnand %p1407_p1, %p1560_p3  ;;  %p1413_p9 = por %p1412_p2, %p1411_p11 }
  0x39   : > { %666 = vmatpush.msra.mxu2 %v314_v9  ;;  %v307_v24 = vld [vmem:[#allocation5 + $0x80] sm:$0xff]  ;;  %559 = vmatpush.msra.mxu1 %v333_v19  ;;  %v329_v27 = vld [vmem:[#allocation5 + $0x130] sm:$0xff]  ;;  %v326_v29 = vld [vmem:[#allocation5 + $0x118] sm:$0xff] }
  0x3a   : > { %440 = vmatpush.msra.mxu0 %v313_v11  ;;  %786 = vmatpush.msra.mxu3 %v332_v16  ;;  %v305_v28 = vld [vmem:[#allocation5 + $0x70] sm:$0xff]  ;;  %v304_v30 = vld [vmem:[#allocation5 + $0x68] sm:$0xff]  ;;  %v327_v31 = vld [vmem:[#allocation5 + $0x120] sm:$0xff]  ;;  %p1409_p8 = pneg %p1408_p4 }
  0x3b   : > { %667 = vmatpush.msra.mxu2 %v312_v14  ;;  %560 = vmatpush.msra.mxu1 %v331_v23  ;;  %v303_v32 = vld [vmem:[#allocation5 + $0x60] sm:$0xff]  ;;  %v324_v33 = vld [vmem:[#allocation5 + $0x108] sm:$0xff]  ;;  %v302_v34 = vld [vmem:[#allocation5 + $0x58] sm:$0xff] }
  0x3c   : > { %441 = vmatpush.msra.mxu0 %v311_v15  ;;  %787 = vmatpush.msra.mxu3 %v330_v21  ;;  %v228_v35 = vld [vmem:[%s1599_s5 + $0x8] sm:$0xff]  ;;  %v301_v36 = vld [vmem:[#allocation5 + $0x50] sm:$0xff]  ;;  %v299_v39 = vld [vmem:[#allocation5 + $0x40] sm:$0xff]  ;;  %p1414_p10 = pnand %p1413_p9, %p1409_p8 }
  0x3d   : > { %668 = vmatpush.msra.mxu2 %v310_v18  ;;  %561 = vmatpush.msra.mxu1 %v329_v27  ;;  %v325_v37 = vld [vmem:[#allocation5 + $0x110] sm:$0xff]  ;;  %v300_v38 = vld [vmem:[#allocation5 + $0x48] sm:$0xff]  ;;  %v323_v40 = vld [vmem:[#allocation5 + $0x100] sm:$0xff] }
  0x3e   : > { %442 = vmatpush.msra.mxu0 %v309_v20  ;;  %788 = vmatpush.msra.mxu3 %v328_v25  ;;  %v298_v41 = vld [vmem:[#allocation5 + $0x38] sm:$0xff]  ;;  %v297_v42 = vld [vmem:[#allocation5 + $0x30] sm:$0xff]  ;;  %v296_v43 = vld [vmem:[#allocation5 + $0x28] sm:$0xff] }
  0x3f   : > { %669 = vmatpush.msra.mxu2 %v308_v22  ;;  %562 = vmatpush.msra.mxu1 %v327_v31  ;;  %v295_v44 = vld [vmem:[#allocation5 + $0x20] sm:$0xff]  ;;  %v294_v45 = vld [vmem:[#allocation5 + $0x18] sm:$0xff]  ;;  %v293_v47 = vld [vmem:[#allocation5 + $0x10] sm:$0xff] }
  0x40   : > { %443 = vmatpush.msra.mxu0 %v307_v24  ;;  %789 = vmatpush.msra.mxu3 %v326_v29  ;;  %v230_v46 = vld [vmem:[%s1599_s5 + $0x18] sm:$0xff]  ;;  %v292_v48 = vld [vmem:[#allocation5 + $0x8] sm:$0xff]  ;;  %v227_v49 = vld [vmem:[%s1599_s5] sm:$0xff] }
  0x41   : > { %670 = vmatpush.msra.mxu2 %v306_v26  ;;  %563 = vmatpush.msra.mxu1 %v325_v37  ;;  %v291_v50 = vld [vmem:[#allocation5] sm:$0xff]  ;;  %v232_v51 = vld [vmem:[%s1599_s5 + $0x28] sm:$0xff]  ;;  %v229_v52 = vld [vmem:[%s1599_s5 + $0x10] sm:$0xff] }
  0x42   : > { %444 = vmatpush.msra.mxu0 %v305_v28  ;;  %790 = vmatpush.msra.mxu3 %v324_v33  ;;  %v234_v53 = vld [vmem:[%s1599_s5 + $0x38] sm:$0xff]  ;;  %v231_v54 = vld [vmem:[%s1599_s5 + $0x20] sm:$0xff]  ;;  %v236_v55 = vld [vmem:[%s1599_s5 + $0x48] sm:$0xff] }
  0x43   : > { %671 = vmatpush.msra.mxu2 %v304_v30  ;;  %1187 = vmatmul.msk.f32.vlgmr.msra.gmra.mxu3 %vm339_vm0, %v228_v35  ;;  %v233_v56 = vld [vmem:[%s1599_s5 + $0x30] sm:$0xff]  ;;  %v238_v57 = vld [vmem:[%s1599_s5 + $0x58] sm:$0xff]  ;;  %v235_v58 = vld [vmem:[%s1599_s5 + $0x40] sm:$0xff] }
  0x44   : > { %445 = vmatpush.msra.mxu0 %v303_v32  ;;  %564 = vmatpush.msra.mxu1 %v323_v40  ;;  %v240_v59 = vld [vmem:[%s1599_s5 + $0x68] sm:$0xff]  ;;  %v237_v60 = vld [vmem:[%s1599_s5 + $0x50] sm:$0xff]  ;;  %v242_v61 = vld [vmem:[%s1599_s5 + $0x78] sm:$0xff] }
  0x45   : > { %672 = vmatpush.msra.mxu2 %v302_v34  ;;  %1155 = vmatmul.msk.f32.vlgmr.msra.gmra.mxu1 %vm339_vm0, %v228_v35  ;;  %v239_v62 = vld [vmem:[%s1599_s5 + $0x60] sm:$0xff]  ;;  %v244_v63 = vld [vmem:[%s1599_s5 + $0x88] sm:$0xff]  ;;  %v241_v0 = vld [vmem:[%s1599_s5 + $0x70] sm:$0xff] }
  0x46   : > { %446 = vmatpush.msra.mxu0 %v301_v36  ;;  %v246_v1 = vld [vmem:[%s1599_s5 + $0x98] sm:$0xff]  ;;  %v243_v2 = vld [vmem:[%s1599_s5 + $0x80] sm:$0xff]  ;;  %v248_v3 = vld [vmem:[%s1599_s5 + $0xa8] sm:$0xff] }
  0x47   : > { %673 = vmatpush.msra.mxu2 %v300_v38  ;;  %v245_v4 = vld [vmem:[%s1599_s5 + $0x90] sm:$0xff]  ;;  %v250_v5 = vld [vmem:[%s1599_s5 + $0xb8] sm:$0xff]  ;;  %v247_v6 = vld [vmem:[%s1599_s5 + $0xa0] sm:$0xff] }
  0x48   : > { %447 = vmatpush.msra.mxu0 %v299_v39  ;;  %v252_v7 = vld [vmem:[%s1599_s5 + $0xc8] sm:$0xff]  ;;  %v249_v8 = vld [vmem:[%s1599_s5 + $0xb0] sm:$0xff]  ;;  %v254_v9 = vld [vmem:[%s1599_s5 + $0xd8] sm:$0xff] }
  0x49   : > { %674 = vmatpush.msra.mxu2 %v298_v41  ;;  %v251_v10 = vld [vmem:[%s1599_s5 + $0xc0] sm:$0xff]  ;;  %v256_v11 = vld [vmem:[%s1599_s5 + $0xe8] sm:$0xff]  ;;  %v253_v12 = vld [vmem:[%s1599_s5 + $0xd0] sm:$0xff] }
  0x4a   : > { %448 = vmatpush.msra.mxu0 %v297_v42  ;;  %v258_v13 = vld [vmem:[%s1599_s5 + $0xf8] sm:$0xff]  ;;  %v255_v14 = vld [vmem:[%s1599_s5 + $0xe0] sm:$0xff]  ;;  %v260_v15 = vld [vmem:[%s1599_s5 + $0x108] sm:$0xff] }
  0x4b   : > { %675 = vmatpush.msra.mxu2 %v296_v43  ;;  %1188 = vmatmul.msk.f32.gmra.mxu3 %vm339_vm0, %v230_v46  ;;  %v257_v16 = vld [vmem:[%s1599_s5 + $0xf0] sm:$0xff]  ;;  %v262_v19 = vld [vmem:[%s1599_s5 + $0x118] sm:$0xff]  ;;  %v259_v20 = vld [vmem:[%s1599_s5 + $0x100] sm:$0xff] }
  0x4c   : > { %449 = vmatpush.msra.mxu0 %v295_v44  ;;  %v1679_v22 = vld [vmem:[#allocation7] sm:$0xff]  ;;  %v264_v27 = vld [vmem:[%s1599_s5 + $0x128] sm:$0xff]  ;;  %v261_v31 = vld [vmem:[%s1599_s5 + $0x110] sm:$0xff] }
  0x4d   : > { %676 = vmatpush.msra.mxu2 %v294_v45  ;;  %1156 = vmatmul.msk.f32.gmra.mxu1 %vm339_vm0, %v230_v46  ;;  %v1689_v29 = vld [vmem:[#allocation7 + $0x8] sm:$0xff]  ;;  %v1694_v34 = vld [vmem:[#allocation7 + $0x10] sm:$0xff]  ;;  %v266_v39 = vld [vmem:[%s1599_s5 + $0x138] sm:$0xff] }
  0x4e   : > { %450 = vmatpush.msra.mxu0 %v293_v47  ;;  %v1701_v41 = vld [vmem:[#allocation7 + $0x18] sm:$0xff]  ;;  %v263_v43 = vld [vmem:[%s1599_s5 + $0x120] sm:$0xff] }
  0x4f   : > { %677 = vmatpush.msra.mxu2 %v292_v48  ;;  %v1706_v46 = vld [vmem:[#allocation7 + $0x20] sm:$0xff] }
  0x50   : > { %678 = vmatmul.f32.vlgmr.msra.gmra.mxu2 %v227_v49  ;;  %451 = vmatpush.msra.mxu0 %v291_v50 }
  0x51   : > { %452 = vmatmul.f32.vlgmr.msra.gmra.mxu0 %v227_v49 }
  0x53   : > { %1189 = vmatmul.msk.f32.gmra.mxu3 %vm339_vm0, %v232_v51 }
  0x55   : > { %1157 = vmatmul.msk.f32.gmra.mxu1 %vm339_vm0, %v232_v51  ;;  %v268_v51 = vld [vmem:[%s1599_s5 + $0x148] sm:$0xff] }
  0x58   : > { %681 = vmatmul.f32.gmra.mxu2 %v229_v52 }
  0x59   : > { %455 = vmatmul.f32.gmra.mxu0 %v229_v52 }
  0x5b   : > { %1190 = vmatmul.msk.f32.gmra.mxu3 %vm339_vm0, %v234_v53 }
  0x5d   : > { %1158 = vmatmul.msk.f32.gmra.mxu1 %vm339_vm0, %v234_v53  ;;  %v1713_v53 = vld [vmem:[#allocation7 + $0x28] sm:$0xff] }
  0x60   : > { %684 = vmatmul.f32.gmra.mxu2 %v231_v54 }
  0x61   : > { %458 = vmatmul.f32.gmra.mxu0 %v231_v54 }
  0x63   : > { %1191 = vmatmul.msk.f32.gmra.mxu3 %vm339_vm0, %v236_v55 }
  0x65   : > { %1159 = vmatmul.msk.f32.gmra.mxu1 %vm339_vm0, %v236_v55  ;;  %v265_v55 = vld [vmem:[%s1599_s5 + $0x130] sm:$0xff] }
  0x68   : > { %687 = vmatmul.f32.gmra.mxu2 %v233_v56 }
  0x69   : > { %461 = vmatmul.f32.gmra.mxu0 %v233_v56 }
  0x6b   : > { %1192 = vmatmul.msk.f32.gmra.mxu3 %vm339_vm0, %v238_v57 }
  0x6d   : > { %1160 = vmatmul.msk.f32.gmra.mxu1 %vm339_vm0, %v238_v57 }
  0x70   : > { %690 = vmatmul.f32.gmra.mxu2 %v235_v58 }
  0x71   : > { %464 = vmatmul.f32.gmra.mxu0 %v235_v58  ;;  %v1718_v58 = vld [vmem:[#allocation7 + $0x30] sm:$0xff] }
  0x73   : > { %1193 = vmatmul.msk.f32.gmra.mxu3 %vm339_vm0, %v240_v59 }
  0x75   : > { %1161 = vmatmul.msk.f32.gmra.mxu1 %vm339_vm0, %v240_v59 }
  0x78   : > { %693 = vmatmul.f32.gmra.mxu2 %v237_v60 }
  0x79   : > { %467 = vmatmul.f32.gmra.mxu0 %v237_v60 }
  0x7b   : > { %1194 = vmatmul.msk.f32.gmra.mxu3 %vm339_vm0, %v242_v61 }
  0x7d   : > { %1162 = vmatmul.msk.f32.gmra.mxu1 %vm339_vm0, %v242_v61 }
  0x80   : > { %696 = vmatmul.f32.gmra.mxu2 %v239_v62 }
  0x81   : > { %470 = vmatmul.f32.gmra.mxu0 %v239_v62 }
  0x83   : > { %1195 = vmatmul.msk.f32.gmra.mxu3 %vm339_vm0, %v244_v63 }
  0x85   : > { %1163 = vmatmul.msk.f32.gmra.mxu1 %vm339_vm0, %v244_v63  ;;  %v270_v63 = vld [vmem:[%s1599_s5 + $0x158] sm:$0xff] }
  0x88   : > { %699 = vmatmul.f32.gmra.mxu2 %v241_v0 }
  0x89   : > { %473 = vmatmul.f32.gmra.mxu0 %v241_v0 }
  0x8b   : > { %1196 = vmatmul.msk.f32.gmra.mxu3 %vm339_vm0, %v246_v1 }
  0x8d   : > { %1164 = vmatmul.msk.f32.gmra.mxu1 %vm339_vm0, %v246_v1  ;;  %v1725_v1 = vld [vmem:[#allocation7 + $0x38] sm:$0xff] }
  0x90   : > { %702 = vmatmul.f32.gmra.mxu2 %v243_v2 }
  0x91   : > { %476 = vmatmul.f32.gmra.mxu0 %v243_v2 }
  0x93   : > { %1197 = vmatmul.msk.f32.gmra.mxu3 %vm339_vm0, %v248_v3 }
  0x95   : > { %1165 = vmatmul.msk.f32.gmra.mxu1 %vm339_vm0, %v248_v3  ;;  %v267_v3 = vld [vmem:[%s1599_s5 + $0x140] sm:$0xff] }
  0x98   : > { %705 = vmatmul.f32.gmra.mxu2 %v245_v4 }
  0x99   : > { %479 = vmatmul.f32.gmra.mxu0 %v245_v4 }
  0x9b   : > { %1198 = vmatmul.msk.f32.gmra.mxu3 %vm339_vm0, %v250_v5 }
  0x9d   : > { %1166 = vmatmul.msk.f32.gmra.mxu1 %vm339_vm0, %v250_v5 }
  0xa0   : > { %708 = vmatmul.f32.gmra.mxu2 %v247_v6 }
  0xa1   : > { %482 = vmatmul.f32.gmra.mxu0 %v247_v6  ;;  %v1730_v6 = vld [vmem:[#allocation7 + $0x40] sm:$0xff] }
  0xa3   : > { %1199 = vmatmul.msk.f32.gmra.mxu3 %vm339_vm0, %v252_v7 }
  0xa5   : > { %1167 = vmatmul.msk.f32.gmra.mxu1 %vm339_vm0, %v252_v7 }
  0xa8   : > { %711 = vmatmul.f32.gmra.mxu2 %v249_v8 }
  0xa9   : > { %485 = vmatmul.f32.gmra.mxu0 %v249_v8 }
  0xab   : > { %1200 = vmatmul.msk.f32.gmra.mxu3 %vm339_vm0, %v254_v9 }
  0xad   : > { %1168 = vmatmul.msk.f32.gmra.mxu1 %vm339_vm0, %v254_v9 }
  0xb0   : > { %714 = vmatmul.f32.gmra.mxu2 %v251_v10 }
  0xb1   : > { %488 = vmatmul.f32.gmra.mxu0 %v251_v10 }
  0xb3   : > { %1201 = vmatmul.msk.f32.gmra.mxu3 %vm339_vm0, %v256_v11 }
  0xb5   : > { %1169 = vmatmul.msk.f32.gmra.mxu1 %vm339_vm0, %v256_v11  ;;  %v272_v11 = vld [vmem:[%s1599_s5 + $0x168] sm:$0xff] }
  0xb8   : > { %717 = vmatmul.f32.gmra.mxu2 %v253_v12 }
  0xb9   : > { %491 = vmatmul.f32.gmra.mxu0 %v253_v12 }
  0xbb   : > { %1202 = vmatmul.msk.f32.gmra.mxu3 %vm339_vm0, %v258_v13 }
  0xbd   : > { %1170 = vmatmul.msk.f32.gmra.mxu1 %vm339_vm0, %v258_v13  ;;  %v1737_v13 = vld [vmem:[#allocation7 + $0x48] sm:$0xff] }
  0xc0   : > { %720 = vmatmul.f32.gmra.mxu2 %v255_v14 }
  0xc1   : > { %494 = vmatmul.f32.gmra.mxu0 %v255_v14 }
  0xc2   : > { %v566_v17 = vpop.f32.mrf.mxu1 }
  0xc3   : > { %1203 = vmatmul.msk.f32.gmra.mxu3 %vm339_vm0, %v260_v15 }
  0xc5   : > { %1171 = vmatmul.msk.f32.gmra.mxu1 %vm339_vm0, %v260_v15  ;;  %v269_v15 = vld [vmem:[%s1599_s5 + $0x150] sm:$0xff] }
  0xc6   : > { %v792_v18 = vpop.f32.mrf.mxu3 }
  0xc8   : > { %723 = vmatmul.f32.gmra.mxu2 %v257_v16 }
  0xc9   : > { %497 = vmatmul.f32.gmra.mxu0 %v257_v16 }
  0xca   : > { %v569_v23 = vpop.f32.mrf.mxu1 }
  0xcb   : > { %1204 = vmatmul.msk.f32.gmra.mxu3 %vm339_vm0, %v262_v19 }
  0xcd   : > { %1172 = vmatmul.msk.f32.gmra.mxu1 %vm339_vm0, %v262_v19 }
  0xce   : > { %v453_v21 = vpop.f32.mrf.mxu0  ;;  %v795_v25 = vpop.f32.mrf.mxu3 }
  0xcf   : > { %v567_v24 = vadd.f32 %v566_v17, %v453_v21 }
  0xd0   : > { %726 = vmatmul.f32.gmra.mxu2 %v259_v20 }
  0xd1   : > { %v904_v26 = vadd.f32 %v1679_v22, %v567_v24  ;;  %500 = vmatmul.f32.gmra.mxu0 %v259_v20  ;;  %v274_v24 = vld [vmem:[%s1599_s5 + $0x178] sm:$0xff] }
  0xd2   : > { %v572_v35 = vpop.f32.mrf.mxu1 }
  0xd3   : > { %968 = vst [vmem:[%s1686_s18] sm:$0xff] %v904_v26  ;;  %v679_v28 = vpop.f32.mrf.mxu2  ;;  %1205 = vmatmul.msk.f32.gmra.mxu3 %vm339_vm0, %v264_v27  ;;  %v1749_v26 = vld [vmem:[#allocation7 + $0x58] sm:$0xff] }
  0xd4   : > { %v793_v30 = vadd.f32 %v792_v18, %v679_v28  ;;  %v1742_v18 = vld [vmem:[#allocation7 + $0x50] sm:$0xff]  ;;  %v271_v28 = vld [vmem:[%s1599_s5 + $0x160] sm:$0xff] }
  0xd5   : > { %1173 = vmatmul.msk.f32.gmra.mxu1 %vm339_vm0, %v264_v27 }
  0xd6   : > { %v905_v32 = vadd.f32 %v1689_v29, %v793_v30  ;;  %v456_v33 = vpop.f32.mrf.mxu0  ;;  %v798_v37 = vpop.f32.mrf.mxu3 }
  0xd7   : > { %v570_v36 = vadd.f32 %v569_v23, %v456_v33 }
  0xd8   : > { %969 = vst [vmem:[%s1686_s18 + $0x8] sm:$0xff] %v905_v32  ;;  %729 = vmatmul.f32.gmra.mxu2 %v261_v31  ;;  %v1754_v32 = vld [vmem:[#allocation7 + $0x60] sm:$0xff] }
  0xd9   : > { %v906_v38 = vadd.f32 %v1694_v34, %v570_v36  ;;  %503 = vmatmul.f32.gmra.mxu0 %v261_v31 }
  0xda   : > { %v575_v47 = vpop.f32.mrf.mxu1 }
  0xdb   : > { %970 = vst [vmem:[%s1686_s18 + $0x10] sm:$0xff] %v906_v38  ;;  %v682_v40 = vpop.f32.mrf.mxu2  ;;  %1206 = vmatmul.msk.f32.gmra.mxu3 %vm339_vm0, %v266_v39  ;;  %v276_v38 = vld [vmem:[%s1599_s5 + $0x188] sm:$0xff] }
  0xdc   : > { %v796_v42 = vadd.f32 %v795_v25, %v682_v40  ;;  %v1761_v40 = vld [vmem:[#allocation7 + $0x68] sm:$0xff] }
  0xdd   : > { %1174 = vmatmul.msk.f32.gmra.mxu1 %vm339_vm0, %v266_v39 }
  0xde   : > { %v907_v44 = vadd.f32 %v1701_v41, %v796_v42  ;;  %v459_v45 = vpop.f32.mrf.mxu0  ;;  %v801_v49 = vpop.f32.mrf.mxu3 }
  0xdf   : > { %v573_v48 = vadd.f32 %v572_v35, %v459_v45 }
  0xe0   : > { %971 = vst [vmem:[%s1686_s18 + $0x18] sm:$0xff] %v907_v44  ;;  %732 = vmatmul.f32.gmra.mxu2 %v263_v43 }
  0xe1   : > { %v908_v50 = vadd.f32 %v1706_v46, %v573_v48  ;;  %506 = vmatmul.f32.gmra.mxu0 %v263_v43  ;;  %v273_v43 = vld [vmem:[%s1599_s5 + $0x170] sm:$0xff] }
  0xe2   : > { %v578_v59 = vpop.f32.mrf.mxu1 }
  0xe3   : > { %972 = vst [vmem:[%s1686_s18 + $0x20] sm:$0xff] %v908_v50  ;;  %v685_v52 = vpop.f32.mrf.mxu2  ;;  %1207 = vmatmul.msk.f32.gmra.mxu3 %vm339_vm0, %v268_v51 }
  0xe4   : > { %v799_v54 = vadd.f32 %v798_v37, %v685_v52  ;;  %v278_v52 = vld [vmem:[%s1599_s5 + $0x198] sm:$0xff] }
  0xe5   : > { %1175 = vmatmul.msk.f32.gmra.mxu1 %vm339_vm0, %v268_v51 }
  0xe6   : > { %v909_v56 = vadd.f32 %v1713_v53, %v799_v54  ;;  %v462_v57 = vpop.f32.mrf.mxu0  ;;  %v804_v61 = vpop.f32.mrf.mxu3 }
  0xe7   : > { %v576_v60 = vadd.f32 %v575_v47, %v462_v57  ;;  %v1766_v47 = vld [vmem:[#allocation7 + $0x70] sm:$0xff]  ;;  %v275_v57 = vld [vmem:[%s1599_s5 + $0x180] sm:$0xff] }
  0xe8   : > { %973 = vst [vmem:[%s1686_s18 + $0x28] sm:$0xff] %v909_v56  ;;  %735 = vmatmul.f32.gmra.mxu2 %v265_v55 }
  0xe9   : > { %v910_v62 = vadd.f32 %v1718_v58, %v576_v60  ;;  %509 = vmatmul.f32.gmra.mxu0 %v265_v55  ;;  %v1773_v55 = vld [vmem:[#allocation7 + $0x78] sm:$0xff] }
  0xea   : > { %v581_v7 = vpop.f32.mrf.mxu1 }
  0xeb   : > { %974 = vst [vmem:[%s1686_s18 + $0x30] sm:$0xff] %v910_v62  ;;  %v688_v0 = vpop.f32.mrf.mxu2  ;;  %1208 = vmatmul.msk.f32.gmra.mxu3 %vm339_vm0, %v270_v63 }
  0xec   : > { %v802_v2 = vadd.f32 %v801_v49, %v688_v0 }
  0xed   : > { %1176 = vmatmul.msk.f32.gmra.mxu1 %vm339_vm0, %v270_v63 }
  0xee   : > { %v911_v4 = vadd.f32 %v1725_v1, %v802_v2  ;;  %v465_v5 = vpop.f32.mrf.mxu0  ;;  %v807_v9 = vpop.f32.mrf.mxu3  ;;  %v280_v2 = vld [vmem:[%s1599_s5 + $0x1a8] sm:$0xff] }
  0xef   : > { %v579_v8 = vadd.f32 %v578_v59, %v465_v5  ;;  %v277_v5 = vld [vmem:[%s1599_s5 + $0x190] sm:$0xff] }
  0xf0   : > { %975 = vst [vmem:[%s1686_s18 + $0x38] sm:$0xff] %v911_v4  ;;  %738 = vmatmul.f32.gmra.mxu2 %v267_v3 }
  0xf1   : > { %v912_v10 = vadd.f32 %v1730_v6, %v579_v8  ;;  %512 = vmatmul.f32.gmra.mxu0 %v267_v3 }
  0xf2   : > { %v584_v19 = vpop.f32.mrf.mxu1 }
  0xf3   : > { %976 = vst [vmem:[%s1686_s18 + $0x40] sm:$0xff] %v912_v10  ;;  %v691_v12 = vpop.f32.mrf.mxu2  ;;  %1209 = vmatmul.msk.f32.gmra.mxu3 %vm339_vm0, %v272_v11 }
  0xf4   : > { %v805_v14 = vadd.f32 %v804_v61, %v691_v12 }
  0xf5   : > { %1177 = vmatmul.msk.f32.gmra.mxu1 %vm339_vm0, %v272_v11 }
  0xf6   : > { %v913_v16 = vadd.f32 %v1737_v13, %v805_v14  ;;  %v468_v17 = vpop.f32.mrf.mxu0  ;;  %v810_v21 = vpop.f32.mrf.mxu3  ;;  %v282_v14 = vld [vmem:[%s1599_s5 + $0x1b8] sm:$0xff] }
  0xf7   : > { %v582_v20 = vadd.f32 %v581_v7, %v468_v17  ;;  %v279_v17 = vld [vmem:[%s1599_s5 + $0x1a0] sm:$0xff] }
  0xf8   : > { %977 = vst [vmem:[%s1686_s18 + $0x48] sm:$0xff] %v913_v16  ;;  %741 = vmatmul.f32.gmra.mxu2 %v269_v15 }
  0xf9   : > { %v914_v23 = vadd.f32 %v1742_v18, %v582_v20  ;;  %515 = vmatmul.f32.gmra.mxu0 %v269_v15 }
  0xfa   : > { %v587_v33 = vpop.f32.mrf.mxu1 }
  0xfb   : > { %978 = vst [vmem:[%s1686_s18 + $0x50] sm:$0xff] %v914_v23  ;;  %v694_v25 = vpop.f32.mrf.mxu2  ;;  %1210 = vmatmul.msk.f32.gmra.mxu3 %vm339_vm0, %v274_v24 }
  0xfc   : > { %v808_v27 = vadd.f32 %v807_v9, %v694_v25 }
  0xfd   : > { %1178 = vmatmul.msk.f32.gmra.mxu1 %vm339_vm0, %v274_v24 }
  0xfe   : > { %v915_v30 = vadd.f32 %v1749_v26, %v808_v27  ;;  %v471_v31 = vpop.f32.mrf.mxu0  ;;  %v813_v36 = vpop.f32.mrf.mxu3  ;;  %v284_v27 = vld [vmem:[%s1599_s5 + $0x1c8] sm:$0xff] }
  0xff   : > { %v585_v35 = vadd.f32 %v584_v19, %v471_v31  ;;  %v281_v31 = vld [vmem:[%s1599_s5 + $0x1b0] sm:$0xff] }
 0x100   : > { %979 = vst [vmem:[%s1686_s18 + $0x58] sm:$0xff] %v915_v30  ;;  %744 = vmatmul.f32.gmra.mxu2 %v271_v28 }
 0x101   : > { %v916_v37 = vadd.f32 %v1754_v32, %v585_v35  ;;  %518 = vmatmul.f32.gmra.mxu0 %v271_v28 }
 0x102   : > { %v590_v48 = vpop.f32.mrf.mxu1 }
 0x103   : > { %980 = vst [vmem:[%s1686_s18 + $0x60] sm:$0xff] %v916_v37  ;;  %v697_v39 = vpop.f32.mrf.mxu2  ;;  %1211 = vmatmul.msk.f32.gmra.mxu3 %vm339_vm0, %v276_v38 }
 0x104   : > { %v811_v42 = vadd.f32 %v810_v21, %v697_v39 }
 0x105   : > { %1179 = vmatmul.msk.f32.gmra.mxu1 %vm339_vm0, %v276_v38 }
 0x106   : > { %v917_v44 = vadd.f32 %v1761_v40, %v811_v42  ;;  %v474_v45 = vpop.f32.mrf.mxu0  ;;  %v816_v50 = vpop.f32.mrf.mxu3  ;;  %v286_v42 = vld [vmem:[%s1599_s5 + $0x1d8] sm:$0xff] }
 0x107   : > { %v588_v49 = vadd.f32 %v587_v33, %v474_v45  ;;  %v283_v45 = vld [vmem:[%s1599_s5 + $0x1c0] sm:$0xff] }
 0x108   : > { %981 = vst [vmem:[%s1686_s18 + $0x68] sm:$0xff] %v917_v44  ;;  %747 = vmatmul.f32.gmra.mxu2 %v273_v43 }
 0x109   : > { %v918_v51 = vadd.f32 %v1766_v47, %v588_v49  ;;  %521 = vmatmul.f32.gmra.mxu0 %v273_v43 }
 0x10a   : > { %v593_v61 = vpop.f32.mrf.mxu1 }
 0x10b   : > { %982 = vst [vmem:[%s1686_s18 + $0x70] sm:$0xff] %v918_v51  ;;  %v700_v54 = vpop.f32.mrf.mxu2  ;;  %1212 = vmatmul.msk.f32.gmra.mxu3 %vm339_vm0, %v278_v52 }
 0x10c   : > { %v814_v56 = vadd.f32 %v813_v36, %v700_v54 }
 0x10d   : > { %1180 = vmatmul.msk.f32.gmra.mxu1 %vm339_vm0, %v278_v52 }
 0x10e   : > { %v919_v59 = vadd.f32 %v1773_v55, %v814_v56  ;;  %v477_v60 = vpop.f32.mrf.mxu0  ;;  %v819_v63 = vpop.f32.mrf.mxu3  ;;  %v288_v56 = vld [vmem:[%s1599_s5 + $0x1e8] sm:$0xff] }
 0x10f   : > { %v591_v62 = vadd.f32 %v590_v48, %v477_v60  ;;  %v285_v60 = vld [vmem:[%s1599_s5 + $0x1d0] sm:$0xff] }
 0x110   : > { %983 = vst [vmem:[%s1686_s18 + $0x78] sm:$0xff] %v919_v59  ;;  %750 = vmatmul.f32.gmra.mxu2 %v275_v57 }
 0x111   : > { %v920_v0 = vadd.f32 %v1679_v22, %v591_v62  ;;  %524 = vmatmul.f32.gmra.mxu0 %v275_v57 }
 0x112   : > { %v596_v9 = vpop.f32.mrf.mxu1 }
 0x113   : > { %984 = vst [vmem:[%s1686_s18 + $0x80] sm:$0xff] %v920_v0  ;;  %v703_v3 = vpop.f32.mrf.mxu2  ;;  %1213 = vmatmul.msk.f32.gmra.mxu3 %vm339_vm0, %v280_v2 }
 0x114   : > { %v817_v4 = vadd.f32 %v816_v50, %v703_v3 }
 0x115   : > { %1181 = vmatmul.msk.f32.gmra.mxu1 %vm339_vm0, %v280_v2 }
 0x116   : > { %v921_v7 = vadd.f32 %v1689_v29, %v817_v4  ;;  %v480_v8 = vpop.f32.mrf.mxu0  ;;  %v822_v11 = vpop.f32.mrf.mxu3  ;;  %v290_v4 = vld [vmem:[%s1599_s5 + $0x1f8] sm:$0xff] }
 0x117   : > { %v594_v10 = vadd.f32 %v593_v61, %v480_v8  ;;  %v287_v8 = vld [vmem:[%s1599_s5 + $0x1e0] sm:$0xff] }
 0x118   : > { %985 = vst [vmem:[%s1686_s18 + $0x88] sm:$0xff] %v921_v7  ;;  %753 = vmatmul.f32.gmra.mxu2 %v277_v5 }
 0x119   : > { %v922_v12 = vadd.f32 %v1694_v34, %v594_v10  ;;  %527 = vmatmul.f32.gmra.mxu0 %v277_v5 }
 0x11a   : > { %v599_v21 = vpop.f32.mrf.mxu1 }
 0x11b   : > { %986 = vst [vmem:[%s1686_s18 + $0x90] sm:$0xff] %v922_v12  ;;  %v706_v15 = vpop.f32.mrf.mxu2  ;;  %1214 = vmatmul.msk.f32.gmra.mxu3 %vm339_vm0, %v282_v14 }
 0x11c   : > { %v820_v16 = vadd.f32 %v819_v63, %v706_v15 }
 0x11d   : > { %1182 = vmatmul.msk.f32.gmra.mxu1 %vm339_vm0, %v282_v14 }
 0x11e   : > { %v923_v19 = vadd.f32 %v1701_v41, %v820_v16  ;;  %v483_v20 = vpop.f32.mrf.mxu0  ;;  %v825_v24 = vpop.f32.mrf.mxu3 }
 0x11f   : > { %v597_v23 = vadd.f32 %v596_v9, %v483_v20 }
 0x120   : > { %987 = vst [vmem:[%s1686_s18 + $0x98] sm:$0xff] %v923_v19  ;;  %756 = vmatmul.f32.gmra.mxu2 %v279_v17  ;;  %v289_v19 = vld [vmem:[%s1599_s5 + $0x1f0] sm:$0xff] }
 0x121   : > { %v924_v25 = vadd.f32 %v1706_v46, %v597_v23  ;;  %530 = vmatmul.f32.gmra.mxu0 %v279_v17 }
 0x122   : > { %v602_v36 = vpop.f32.mrf.mxu1 }
 0x123   : > { %988 = vst [vmem:[%s1686_s18 + $0xa0] sm:$0xff] %v924_v25  ;;  %v709_v28 = vpop.f32.mrf.mxu2  ;;  %1215 = vmatmul.msk.f32.gmra.mxu3 %vm339_vm0, %v284_v27 }
 0x124   : > { %v823_v30 = vadd.f32 %v822_v11, %v709_v28 }
 0x125   : > { %1183 = vmatmul.msk.f32.gmra.mxu1 %vm339_vm0, %v284_v27 }
 0x126   : > { %v925_v33 = vadd.f32 %v1713_v53, %v823_v30  ;;  %v486_v35 = vpop.f32.mrf.mxu0  ;;  %v828_v38 = vpop.f32.mrf.mxu3 }
 0x127   : > { %v600_v37 = vadd.f32 %v599_v21, %v486_v35 }
 0x128   : > { %989 = vst [vmem:[%s1686_s18 + $0xa8] sm:$0xff] %v925_v33  ;;  %759 = vmatmul.f32.gmra.mxu2 %v281_v31 }
 0x129   : > { %v926_v39 = vadd.f32 %v1718_v58, %v600_v37  ;;  %533 = vmatmul.f32.gmra.mxu0 %v281_v31 }
 0x12a   : > { %v605_v50 = vpop.f32.mrf.mxu1 }
 0x12b   : > { %990 = vst [vmem:[%s1686_s18 + $0xb0] sm:$0xff] %v926_v39  ;;  %v712_v43 = vpop.f32.mrf.mxu2  ;;  %1216 = vmatmul.msk.f32.gmra.mxu3 %vm339_vm0, %v286_v42 }
 0x12c   : > { %v826_v44 = vadd.f32 %v825_v24, %v712_v43 }
 0x12d   : > { %1184 = vmatmul.msk.f32.gmra.mxu1 %vm339_vm0, %v286_v42 }
 0x12e   : > { %v927_v48 = vadd.f32 %v1725_v1, %v826_v44  ;;  %v489_v49 = vpop.f32.mrf.mxu0  ;;  %v831_v52 = vpop.f32.mrf.mxu3 }
 0x12f   : > { %v603_v51 = vadd.f32 %v602_v36, %v489_v49 }
 0x130   : > { %991 = vst [vmem:[%s1686_s18 + $0xb8] sm:$0xff] %v927_v48  ;;  %762 = vmatmul.f32.gmra.mxu2 %v283_v45 }
 0x131   : > { %v928_v54 = vadd.f32 %v1730_v6, %v603_v51  ;;  %536 = vmatmul.f32.gmra.mxu0 %v283_v45 }
 0x132   : > { %v608_v63 = vpop.f32.mrf.mxu1 }
 0x133   : > { %992 = vst [vmem:[%s1686_s18 + $0xc0] sm:$0xff] %v928_v54  ;;  %v715_v57 = vpop.f32.mrf.mxu2  ;;  %1217 = vmatmul.msk.f32.gmra.mxu3 %vm339_vm0, %v288_v56 }
 0x134   : > { %v829_v59 = vadd.f32 %v828_v38, %v715_v57 }
 0x135   : > { %1185 = vmatmul.msk.f32.gmra.mxu1 %vm339_vm0, %v288_v56 }
 0x136   : > { %v929_v61 = vadd.f32 %v1737_v13, %v829_v59  ;;  %v492_v62 = vpop.f32.mrf.mxu0  ;;  %v834_v2 = vpop.f32.mrf.mxu3 }
 0x137   : > { %v606_v0 = vadd.f32 %v605_v50, %v492_v62 }
 0x138   : > { %993 = vst [vmem:[%s1686_s18 + $0xc8] sm:$0xff] %v929_v61  ;;  %765 = vmatmul.f32.gmra.mxu2 %v285_v60 }
 0x139   : > { %v930_v3 = vadd.f32 %v1742_v18, %v606_v0  ;;  %539 = vmatmul.f32.gmra.mxu0 %v285_v60 }
 0x13a   : > { %v611_v11 = vpop.f32.mrf.mxu1 }
 0x13b   : > { %994 = vst [vmem:[%s1686_s18 + $0xd0] sm:$0xff] %v930_v3  ;;  %v718_v5 = vpop.f32.mrf.mxu2  ;;  %1218 = vmatmul.msk.f32.gmra.mxu3 %vm339_vm0, %v290_v4 }
 0x13c   : > { %v832_v7 = vadd.f32 %v831_v52, %v718_v5 }
 0x13d   : > { %1186 = vmatmul.msk.f32.gmra.mxu1 %vm339_vm0, %v290_v4 }
 0x13e   : > { %v931_v9 = vadd.f32 %v1749_v26, %v832_v7  ;;  %v495_v10 = vpop.f32.mrf.mxu0  ;;  %v837_v14 = vpop.f32.mrf.mxu3 }
 0x13f   : > { %v609_v12 = vadd.f32 %v608_v63, %v495_v10 }
 0x140   : > { %995 = vst [vmem:[%s1686_s18 + $0xd8] sm:$0xff] %v931_v9  ;;  %768 = vmatmul.f32.gmra.mxu2 %v287_v8 }
 0x141   : > { %v932_v15 = vadd.f32 %v1754_v32, %v609_v12  ;;  %542 = vmatmul.f32.gmra.mxu0 %v287_v8 }
 0x142   : > { %v614_v23 = vpop.f32.mrf.mxu1 }
 0x143   : > { %996 = vst [vmem:[%s1686_s18 + $0xe0] sm:$0xff] %v932_v15  ;;  %v721_v16 = vpop.f32.mrf.mxu2 }
 0x144   : > { %v835_v17 = vadd.f32 %v834_v2, %v721_v16 }
 0x146   : > { %v933_v20 = vadd.f32 %v1761_v40, %v835_v17  ;;  %v498_v21 = vpop.f32.mrf.mxu0  ;;  %v840_v25 = vpop.f32.mrf.mxu3 }
 0x147   : > { %v612_v24 = vadd.f32 %v611_v11, %v498_v21 }
 0x148   : > { %997 = vst [vmem:[%s1686_s18 + $0xe8] sm:$0xff] %v933_v20  ;;  %771 = vmatmul.f32.gmra.mxu2 %v289_v19 }
 0x149   : > { %v934_v27 = vadd.f32 %v1766_v47, %v612_v24  ;;  %545 = vmatmul.f32.gmra.mxu0 %v289_v19 }
 0x14a   : > { %v617_v35 = vpop.f32.mrf.mxu1 }
 0x14b   : > { %998 = vst [vmem:[%s1686_s18 + $0xf0] sm:$0xff] %v934_v27  ;;  %v724_v28 = vpop.f32.mrf.mxu2 }
 0x14c   : > { %v838_v30 = vadd.f32 %v837_v14, %v724_v28 }
 0x14e   : > { %v935_v31 = vadd.f32 %v1773_v55, %v838_v30  ;;  %v501_v33 = vpop.f32.mrf.mxu0  ;;  %v843_v37 = vpop.f32.mrf.mxu3 }
 0x14f   : > { %v615_v36 = vadd.f32 %v614_v23, %v501_v33 }
 0x150   : > { %999 = vst [vmem:[%s1686_s18 + $0xf8] sm:$0xff] %v935_v31 }
 0x151   : > { %v936_v38 = vadd.f32 %v1679_v22, %v615_v36 }
 0x152   : > { %v620_v45 = vpop.f32.mrf.mxu1 }
 0x153   : > { %1000 = vst [vmem:[%s1686_s18 + $0x100] sm:$0xff] %v936_v38  ;;  %v727_v39 = vpop.f32.mrf.mxu2 }
 0x154   : > { %v841_v42 = vadd.f32 %v840_v25, %v727_v39 }
 0x156   : > { %v937_v43 = vadd.f32 %v1689_v29, %v841_v42  ;;  %v504_v44 = vpop.f32.mrf.mxu0  ;;  %v846_v49 = vpop.f32.mrf.mxu3 }
 0x157   : > { %v618_v48 = vadd.f32 %v617_v35, %v504_v44 }
 0x158   : > { %1001 = vst [vmem:[%s1686_s18 + $0x108] sm:$0xff] %v937_v43 }
 0x159   : > { %v938_v50 = vadd.f32 %v1694_v34, %v618_v48 }
 0x15a   : > { %v623_v57 = vpop.f32.mrf.mxu1 }
 0x15b   : > { %1002 = vst [vmem:[%s1686_s18 + $0x110] sm:$0xff] %v938_v50  ;;  %v730_v51 = vpop.f32.mrf.mxu2 }
 0x15c   : > { %v844_v52 = vadd.f32 %v843_v37, %v730_v51 }
 0x15e   : > { %v939_v54 = vadd.f32 %v1701_v41, %v844_v52  ;;  %v507_v56 = vpop.f32.mrf.mxu0  ;;  %v849_v60 = vpop.f32.mrf.mxu3 }
 0x15f   : > { %v621_v59 = vadd.f32 %v620_v45, %v507_v56 }
 0x160   : > { %1003 = vst [vmem:[%s1686_s18 + $0x118] sm:$0xff] %v939_v54 }
 0x161   : > { %v940_v61 = vadd.f32 %v1706_v46, %v621_v59 }
 0x162   : > { %v626_v3 = vpop.f32.mrf.mxu1 }
 0x163   : > { %1004 = vst [vmem:[%s1686_s18 + $0x120] sm:$0xff] %v940_v61  ;;  %v733_v62 = vpop.f32.mrf.mxu2 }
 0x164   : > { %v847_v63 = vadd.f32 %v846_v49, %v733_v62 }
 0x166   : > { %v941_v0 = vadd.f32 %v1713_v53, %v847_v63  ;;  %v510_v2 = vpop.f32.mrf.mxu0  ;;  %v852_v5 = vpop.f32.mrf.mxu3 }
 0x167   : > { %v624_v4 = vadd.f32 %v623_v57, %v510_v2 }
 0x168   : > { %1005 = vst [vmem:[%s1686_s18 + $0x128] sm:$0xff] %v941_v0 }
 0x169   : > { %v942_v7 = vadd.f32 %v1718_v58, %v624_v4 }
 0x16a   : > { %v629_v12 = vpop.f32.mrf.mxu1 }
 0x16b   : > { %1006 = vst [vmem:[%s1686_s18 + $0x130] sm:$0xff] %v942_v7  ;;  %v736_v8 = vpop.f32.mrf.mxu2 }
 0x16c   : > { %v850_v9 = vadd.f32 %v849_v60, %v736_v8 }
 0x16e   : > { %v943_v10 = vadd.f32 %v1725_v1, %v850_v9  ;;  %v513_v11 = vpop.f32.mrf.mxu0  ;;  %v855_v15 = vpop.f32.mrf.mxu3 }
 0x16f   : > { %v627_v14 = vadd.f32 %v626_v3, %v513_v11 }
 0x170   : > { %1007 = vst [vmem:[%s1686_s18 + $0x138] sm:$0xff] %v943_v10 }
 0x171   : > { %v944_v16 = vadd.f32 %v1730_v6, %v627_v14 }
 0x172   : > { %v632_v23 = vpop.f32.mrf.mxu1 }
 0x173   : > { %1008 = vst [vmem:[%s1686_s18 + $0x140] sm:$0xff] %v944_v16  ;;  %v739_v17 = vpop.f32.mrf.mxu2 }
 0x174   : > { %v853_v19 = vadd.f32 %v852_v5, %v739_v17 }
 0x176   : > { %v945_v20 = vadd.f32 %v1737_v13, %v853_v19  ;;  %v516_v21 = vpop.f32.mrf.mxu0  ;;  %v858_v25 = vpop.f32.mrf.mxu3 }
 0x177   : > { %v630_v24 = vadd.f32 %v629_v12, %v516_v21 }
 0x178   : > { %1009 = vst [vmem:[%s1686_s18 + $0x148] sm:$0xff] %v945_v20 }
 0x179   : > { %v946_v27 = vadd.f32 %v1742_v18, %v630_v24 }
 0x17a   : > { %v635_v35 = vpop.f32.mrf.mxu1 }
 0x17b   : > { %1010 = vst [vmem:[%s1686_s18 + $0x150] sm:$0xff] %v946_v27  ;;  %v742_v28 = vpop.f32.mrf.mxu2 }
 0x17c   : > { %v856_v30 = vadd.f32 %v855_v15, %v742_v28 }
 0x17e   : > { %v947_v31 = vadd.f32 %v1749_v26, %v856_v30  ;;  %v519_v33 = vpop.f32.mrf.mxu0  ;;  %v861_v37 = vpop.f32.mrf.mxu3 }
 0x17f   : > { %v633_v36 = vadd.f32 %v632_v23, %v519_v33 }
 0x180   : > { %1011 = vst [vmem:[%s1686_s18 + $0x158] sm:$0xff] %v947_v31 }
 0x181   : > { %v948_v38 = vadd.f32 %v1754_v32, %v633_v36 }
 0x182   : > { %v638_v45 = vpop.f32.mrf.mxu1 }
 0x183   : > { %1012 = vst [vmem:[%s1686_s18 + $0x160] sm:$0xff] %v948_v38  ;;  %v745_v39 = vpop.f32.mrf.mxu2 }
 0x184   : > { %v859_v42 = vadd.f32 %v858_v25, %v745_v39 }
 0x186   : > { %v949_v43 = vadd.f32 %v1761_v40, %v859_v42  ;;  %v522_v44 = vpop.f32.mrf.mxu0  ;;  %v864_v49 = vpop.f32.mrf.mxu3 }
 0x187   : > { %v636_v48 = vadd.f32 %v635_v35, %v522_v44 }
 0x188   : > { %1013 = vst [vmem:[%s1686_s18 + $0x168] sm:$0xff] %v949_v43 }
 0x189   : > { %v950_v50 = vadd.f32 %v1766_v47, %v636_v48 }
 0x18a   : > { %v641_v57 = vpop.f32.mrf.mxu1 }
 0x18b   : > { %1014 = vst [vmem:[%s1686_s18 + $0x170] sm:$0xff] %v950_v50  ;;  %v748_v51 = vpop.f32.mrf.mxu2 }
 0x18c   : > { %v862_v52 = vadd.f32 %v861_v37, %v748_v51 }
 0x18e   : > { %v951_v54 = vadd.f32 %v1773_v55, %v862_v52  ;;  %v525_v56 = vpop.f32.mrf.mxu0  ;;  %v867_v60 = vpop.f32.mrf.mxu3 }
 0x18f   : > { %v639_v59 = vadd.f32 %v638_v45, %v525_v56 }
 0x190   : > { %1015 = vst [vmem:[%s1686_s18 + $0x178] sm:$0xff] %v951_v54 }
 0x191   : > { %v952_v61 = vadd.f32 %v1679_v22, %v639_v59 }
 0x192   : > { %v644_v3 = vpop.f32.mrf.mxu1 }
 0x193   : > { %1016 = vst [vmem:[%s1686_s18 + $0x180] sm:$0xff] %v952_v61  ;;  %v751_v62 = vpop.f32.mrf.mxu2 }
 0x194   : > { %v865_v63 = vadd.f32 %v864_v49, %v751_v62 }
 0x196   : > { %v953_v0 = vadd.f32 %v1689_v29, %v865_v63  ;;  %v528_v2 = vpop.f32.mrf.mxu0  ;;  %v870_v5 = vpop.f32.mrf.mxu3 }
 0x197   : > { %v642_v4 = vadd.f32 %v641_v57, %v528_v2 }
 0x198   : > { %1017 = vst [vmem:[%s1686_s18 + $0x188] sm:$0xff] %v953_v0 }
 0x199   : > { %v954_v7 = vadd.f32 %v1694_v34, %v642_v4 }
 0x19a   : > { %v647_v11 = vpop.f32.mrf.mxu1 }
 0x19b   : > { %1018 = vst [vmem:[%s1686_s18 + $0x190] sm:$0xff] %v954_v7  ;;  %v754_v8 = vpop.f32.mrf.mxu2 }
 0x19c   : > { %v868_v9 = vadd.f32 %v867_v60, %v754_v8 }
 0x19e   : > { %v955_v22 = vadd.f32 %v1701_v41, %v868_v9  ;;  %v531_v10 = vpop.f32.mrf.mxu0  ;;  %v873_v14 = vpop.f32.mrf.mxu3 }
 0x19f   : > { %v645_v12 = vadd.f32 %v644_v3, %v531_v10 }
 0x1a0   : > { %1019 = vst [vmem:[%s1686_s18 + $0x198] sm:$0xff] %v955_v22 }
 0x1a1   : > { %v956_v29 = vadd.f32 %v1706_v46, %v645_v12 }
 0x1a2   : > { %v650_v19 = vpop.f32.mrf.mxu1 }
 0x1a3   : > { %1020 = vst [vmem:[%s1686_s18 + $0x1a0] sm:$0xff] %v956_v29  ;;  %v757_v15 = vpop.f32.mrf.mxu2 }
 0x1a4   : > { %v871_v16 = vadd.f32 %v870_v5, %v757_v15 }
 0x1a6   : > { %v957_v34 = vadd.f32 %v1713_v53, %v871_v16  ;;  %v534_v17 = vpop.f32.mrf.mxu0  ;;  %v876_v23 = vpop.f32.mrf.mxu3 }
 0x1a7   : > { %v648_v20 = vadd.f32 %v647_v11, %v534_v17 }
 0x1a8   : > { %1021 = vst [vmem:[%s1686_s18 + $0x1a8] sm:$0xff] %v957_v34 }
 0x1a9   : > { %v958_v41 = vadd.f32 %v1718_v58, %v648_v20 }
 0x1aa   : > { %v653_v28 = vpop.f32.mrf.mxu1 }
 0x1ab   : > { %1022 = vst [vmem:[%s1686_s18 + $0x1b0] sm:$0xff] %v958_v41  ;;  %v760_v21 = vpop.f32.mrf.mxu2 }
 0x1ac   : > { %v874_v24 = vadd.f32 %v873_v14, %v760_v21 }
 0x1ae   : > { %v959_v46 = vadd.f32 %v1725_v1, %v874_v24  ;;  %v537_v25 = vpop.f32.mrf.mxu0  ;;  %v879_v33 = vpop.f32.mrf.mxu3 }
 0x1af   : > { %v651_v27 = vadd.f32 %v650_v19, %v537_v25 }
 0x1b0   : > { %1023 = vst [vmem:[%s1686_s18 + $0x1b8] sm:$0xff] %v959_v46 }
 0x1b1   : > { %v960_v53 = vadd.f32 %v1730_v6, %v651_v27 }
 0x1b2   : > { %v656_v37 = vpop.f32.mrf.mxu1 }
 0x1b3   : > { %1024 = vst [vmem:[%s1686_s18 + $0x1c0] sm:$0xff] %v960_v53  ;;  %v763_v30 = vpop.f32.mrf.mxu2 }
 0x1b4   : > { %v877_v31 = vadd.f32 %v876_v23, %v763_v30 }
 0x1b6   : > { %v961_v58 = vadd.f32 %v1737_v13, %v877_v31  ;;  %v540_v35 = vpop.f32.mrf.mxu0  ;;  %v882_v44 = vpop.f32.mrf.mxu3 }
 0x1b7   : > { %v654_v36 = vadd.f32 %v653_v28, %v540_v35 }
 0x1b8   : > { %1025 = vst [vmem:[%s1686_s18 + $0x1c8] sm:$0xff] %v961_v58 }
 0x1b9   : > { %v962_v1 = vadd.f32 %v1742_v18, %v654_v36 }
 0x1ba   : > { %v659_v49 = vpop.f32.mrf.mxu1 }
 0x1bb   : > { %1026 = vst [vmem:[%s1686_s18 + $0x1d0] sm:$0xff] %v962_v1  ;;  %v766_v38 = vpop.f32.mrf.mxu2 }
 0x1bc   : > { %v880_v39 = vadd.f32 %v879_v33, %v766_v38 }
 0x1be   : > { %v963_v6 = vadd.f32 %v1749_v26, %v880_v39  ;;  %v543_v42 = vpop.f32.mrf.mxu0 }
 0x1bf   : > { %v657_v43 = vadd.f32 %v656_v37, %v543_v42 }
 0x1c0   : > { %1027 = vst [vmem:[%s1686_s18 + $0x1d8] sm:$0xff] %v963_v6 }
 0x1c1   : > { %v964_v13 = vadd.f32 %v1754_v32, %v657_v43  ;;  %v885_v32 = vpop.f32.mrf.mxu3 }
 0x1c3   : > { %1028 = vst [vmem:[%s1686_s18 + $0x1e0] sm:$0xff] %v964_v13  ;;  %v769_v45 = vpop.f32.mrf.mxu2 }
 0x1c4   : > { %v883_v48 = vadd.f32 %v882_v44, %v769_v45 }
 0x1c6   : > { %v965_v18 = vadd.f32 %v1761_v40, %v883_v48  ;;  %v546_v50 = vpop.f32.mrf.mxu0 }
 0x1c7   : > { %v660_v51 = vadd.f32 %v659_v49, %v546_v50 }
 0x1c8   : > { %1029 = vst [vmem:[%s1686_s18 + $0x1e8] sm:$0xff] %v965_v18 }
 0x1c9   : > { %v966_v26 = vadd.f32 %v1766_v47, %v660_v51 }
 0x1cb   : > { %1030 = vst [vmem:[%s1686_s18 + $0x1f0] sm:$0xff] %v966_v26  ;;  %v772_v52 = vpop.f32.mrf.mxu2 }
 0x1cc   : > { %v886_v54 = vadd.f32 %v885_v32, %v772_v52 }
 0x1ce   : > { %v967_v40 = vadd.f32 %v1773_v55, %v886_v54 }
 0x1d0   : > { %1031 = vst [vmem:[%s1686_s18 + $0x1f8] sm:$0xff] %v967_v40 }
 0x1d1   : > { %1417 = shalt.err (!%p1414_p10)
}
 0x1d2   : > { %s1466_s11 = smov 256   ;;  %s1467_s24 = smov 16  }
 0x1d3   : > { %1239 = dma.vmem_to_hbm [thread:$0]  (%p1560_p3), %s1047_s27, 8192, %s1049_s28, %s1033_s16, %s1466_s11, %s1466_s11, %s1467_s24  }
 0x1d4 PF: > { %s1063_s25 = sand.u32 1, %s1448_s12   ;;  %p1944_p12 = scmp.ge.s32.totalorder %s1460_s15, 2 }
 0x1d5   : > { %s1064_s5 = scalar_lea.sflag [#allocation4], %s1063_s25 }
 0x1d6   : > { %p1253_p13 = pnand %p1944_p12, %p1523_p6 }
 0x1d8   : > { %p1254_p0 = pneg %p1253_p13 }
 0x1da   : > { %1443 = dma.done.wait (%p1254_p0), %s1064_s5, 8192  }
 0x1db   : > { %1445 = vsyncadd (%p1254_p0), %s1064_s5, 4294959104  ;;  %p17_p5 = scmp.ge.s32.totalorder %s1550_s6, 4   ;;  %s1945_s12 = smov %s1452_s13 }
 0x1dc   : > { %s1946_s13 = smov %s1456_s14  ;;  %s1947_s14 = smov %s1566_s10 }
 0x1dd   : > { %s1948_s15 = smov %s1550_s6  ;;  %19 = sbr.rel (!%p17_p5) target bundleno = 6 (0x6), region = 85 }
 0x1e2   :  { %1070 = vsyncpa [#allocation3], 1 }
 0x1e3   :  { %1072 = vsyncpa [#allocation3 + $0x1], 1 }
 0x1e4   :  { %1073 = vsyncpa [#allocation6], 1 }
 0x1e5   :  { %1074 = vsyncpa [#allocation4], 1 }
 0x1e6   :  { %1076 = vsyncpa [#allocation4 + $0x1], 1 }

</bundles_post_ra>
